<compile_context>
chip_gen: v7x
topology: tpu7x:2x2x1
jax: 0.10.0
libtpu: 0.0.40
codegen_flags: <defaults>
</compile_context>

<pallas_src>
import functools

import jax
import jax.numpy as jnp
from jax.experimental import pallas as pl
from jax.experimental.pallas import tpu as pltpu


def _round_up(a, b):
    return (a + b - 1) // b * b


def _ffn_kernel(x_ref, w1_ref, b1_ref, w2_ref, b2_ref, o_ref, acc_ref):
    # x_ref:  (tm, E)  f32       w1_ref: (E, th)  bf16     b1_ref: (1, th) f32
    # w2_ref: (th, E)  bf16      b2_ref: (1, E)   f32
    # o_ref:  (tm, E)  f32       acc_ref: (tm, E) f32 scratch
    k = pl.program_id(1)

    @pl.when(k == 0)
    def _init():
        acc_ref[...] = jnp.zeros_like(acc_ref)

    # First matmul: bf16 on the MXU, f32 accumulation.
    h = jnp.dot(x_ref[...].astype(jnp.bfloat16), w1_ref[...],
                preferred_element_type=jnp.float32)
    h = jnp.maximum(h + b1_ref[...], 0.0)          # bias + ReLU in f32
    # dropout == identity (eval mode)

    # Second matmul: accumulate partial (tm, E) contribution of this H slice.
    acc_ref[...] += jnp.dot(h.astype(jnp.bfloat16), w2_ref[...],
                            preferred_element_type=jnp.float32)

    @pl.when(k == pl.num_programs(1) - 1)
    def _finalize():
        o_ref[...] = (acc_ref[...] + b2_ref[...]).astype(o_ref.dtype)


@functools.partial(jax.jit, static_argnames=("tile_m", "tile_h"))
def feed_forward(x, w1, b1, w2, b2, *, tile_m=None, tile_h=None):
    """x: (..., E) float32.  w1: (E, H), b1: (H,), w2: (H, E), b2: (E,).
    Returns same shape/dtype as x."""
    orig_shape = x.shape
    E = orig_shape[-1]
    H = w1.shape[1]
    x2d = x.reshape(-1, E)
    M = x2d.shape[0]

    # ---- lane/sublane friendly padding and tile selection ----
    E_pad = _round_up(E, 128)
    H_pad = _round_up(H, 128)

    if tile_h is None:
        tile_h = min(512, H_pad)
    tile_h = min(_round_up(tile_h, 128), H_pad)
    H_pad = _round_up(H_pad, tile_h)            # ensure H_pad % tile_h == 0

    if tile_m is None:
        tile_m = min(256, _round_up(max(M, 8), 8))
    tile_m = _round_up(tile_m, 8)
    M_pad = _round_up(M, tile_m)

    grid = (M_pad // tile_m, H_pad // tile_h)

    # ---- pad + cast operands (weights -> bf16 for the MXU) ----
    x2d_p = jnp.pad(x2d, ((0, M_pad - M), (0, E_pad - E)))
    w1_p = jnp.pad(w1, ((0, E_pad - E), (0, H_pad - H))).astype(jnp.bfloat16)
    w2_p = jnp.pad(w2, ((0, H_pad - H), (0, E_pad - E))).astype(jnp.bfloat16)
    b1_p = jnp.pad(b1, (0, H_pad - H)).reshape(1, H_pad).astype(jnp.float32)
    b2_p = jnp.pad(b2, (0, E_pad - E)).reshape(1, E_pad).astype(jnp.float32)

    # ---- VMEM budget: double-buffered tiles + resident accumulator ----
    vmem_bytes = (
        2 * tile_m * E_pad * 4          # x tiles (f32, double-buffered)
        + 2 * tile_m * E_pad * 4        # out tiles (f32, double-buffered)
        + 2 * E_pad * tile_h * 2        # W1 slices (bf16, double-buffered)
        + 2 * tile_h * E_pad * 2        # W2 slices (bf16, double-buffered)
        + 2 * 8 * tile_h * 4            # b1 slices
        + 2 * 8 * E_pad * 4             # b2
        + tile_m * E_pad * 4            # f32 accumulator scratch
        + tile_m * tile_h * 4           # h intermediate
    )
    vmem_limit = min(max(2 * vmem_bytes, 32 * 1024 * 1024), 64 * 1024 * 1024)

    cost = pl.CostEstimate(
        flops=4 * M_pad * E_pad * H_pad,
        transcendentals=0,
        bytes_accessed=(2 * M_pad * E_pad * 4
                        + grid[0] * 2 * E_pad * H_pad * 2),
    )

    out2d = pl.pallas_call(
        _ffn_kernel,
        out_shape=jax.ShapeDtypeStruct((M_pad, E_pad), x.dtype),
        grid_spec=pltpu.PrefetchScalarGridSpec(
            num_scalar_prefetch=0,
            grid=grid,
            in_specs=[
                pl.BlockSpec((tile_m, E_pad), lambda i, k: (i, 0)),   # x tile
                pl.BlockSpec((E_pad, tile_h), lambda i, k: (0, k)),   # W1 slice
                pl.BlockSpec((1, tile_h),     lambda i, k: (0, k)),   # b1 slice
                pl.BlockSpec((tile_h, E_pad), lambda i, k: (k, 0)),   # W2 slice
                pl.BlockSpec((1, E_pad),      lambda i, k: (0, 0)),   # b2
            ],
            out_specs=pl.BlockSpec((tile_m, E_pad), lambda i, k: (i, 0)),
            scratch_shapes=[pltpu.VMEM((tile_m, E_pad), jnp.float32)],
        ),
        compiler_params=pltpu.CompilerParams(
            dimension_semantics=("parallel", "arbitrary"),
            vmem_limit_bytes=int(vmem_limit),
        ),
        cost_estimate=cost,
    )(x2d_p, w1_p, b1_p, w2_p, b2_p)

    return out2d[:M, :E].reshape(orig_shape)


def init_params(key, embed_size, hidden_size, dtype=jnp.float32):
    """Deterministic init mimicking nn.Linear default (uniform +/- 1/sqrt(fan_in)).
    Weights are stored already transposed for the kernel: W1 (E,H), W2 (H,E)."""
    k1, k2, k3, k4 = jax.random.split(key, 4)
    lim1 = 1.0 / (embed_size ** 0.5)
    lim2 = 1.0 / (hidden_size ** 0.5)
    w1 = jax.random.uniform(k1, (embed_size, hidden_size), dtype, -lim1, lim1)
    b1 = jax.random.uniform(k2, (hidden_size,), dtype, -lim1, lim1)
    w2 = jax.random.uniform(k3, (hidden_size, embed_size), dtype, -lim2, lim2)
    b2 = jax.random.uniform(k4, (embed_size,), dtype, -lim2, lim2)
    return w1, b1, w2, b2


if __name__ == "__main__":
    key = jax.random.PRNGKey(0)
    batch, seq, embed_size, hidden_size = 2, 8, 32, 64
    dropout_p = 0.1  # inactive in eval mode

    k_x, k_p = jax.random.split(key)
    x = jax.random.normal(k_x, (batch, seq, embed_size), dtype=jnp.float32)
    w1, b1, w2, b2 = init_params(k_p, embed_size, hidden_size)

    out = feed_forward(x, w1, b1, w2, b2)
    out = jax.block_until_ready(out)
    assert out.shape == x.shape and out.dtype == x.dtype

    # Reference 1: bf16-matmul reference (matches kernel numerics closely).
    xb = x.astype(jnp.bfloat16)
    hb = jnp.maximum(
        jnp.dot(xb.reshape(-1, embed_size), w1.astype(jnp.bfloat16),
                preferred_element_type=jnp.float32) + b1, 0.0)
    ref_bf16 = (jnp.dot(hb.astype(jnp.bfloat16), w2.astype(jnp.bfloat16),
                        preferred_element_type=jnp.float32) + b2
                ).reshape(x.shape)
    assert jnp.allclose(out, ref_bf16, atol=1e-3, rtol=1e-3)

    # Reference 2: pure f32 module semantics (looser tol due to bf16 MXU).
    ref_f32 = jnp.maximum(x @ w1 + b1, 0.0) @ w2 + b2
    assert jnp.allclose(out, ref_f32, atol=5e-2, rtol=5e-2)

    print("KERNEL_OK")
</pallas_src>

<mosaic_0001>
module attributes {stable_mosaic.version = 11 : i64} {
  func.func @_ffn_kernel(%arg0: i32, %arg1: i32, %arg2: memref<16x128xf32, #tpu.memory_space<vmem>>, %arg3: memref<128x128xbf16, #tpu.memory_space<vmem>>, %arg4: memref<1x128xf32, #tpu.memory_space<vmem>>, %arg5: memref<128x128xbf16, #tpu.memory_space<vmem>>, %arg6: memref<1x128xf32, #tpu.memory_space<vmem>>, %arg7: memref<16x128xf32, #tpu.memory_space<vmem>>, %arg8: memref<16x128xf32, #tpu.memory_space<vmem>>) attributes {dimension_semantics = [#tpu.dimension_semantics<parallel>, #tpu.dimension_semantics<arbitrary>], iteration_bounds = array<i64: 1, 1>, scalar_prefetch = 0 : i64, scratch_operands = 1 : i64, tpu.core_type = #tpu.core_type<tc>, window_params = [{transform_indices = @transform_0, window_bounds = array<i64: 16, 128>}, {transform_indices = @transform_1, window_bounds = array<i64: 128, 128>}, {transform_indices = @transform_2, window_bounds = array<i64: 1, 128>}, {transform_indices = @transform_3, window_bounds = array<i64: 128, 128>}, {pipeline_mode = #tpu.pipeline_mode<synchronous>, transform_indices = @transform_4, window_bounds = array<i64: 1, 128>}, {transform_indices = @transform_5, window_bounds = array<i64: 16, 128>}]} {
    %c0_i32 = arith.constant 0 : i32
    %0 = arith.cmpi eq, %arg1, %c0_i32 : i32
    %1 = arith.extui %0 : i1 to i32
    %c0_i32_0 = arith.constant 0 : i32
    %2 = arith.cmpi ne, %1, %c0_i32_0 : i32
    scf.if %2 {
      %cst_16 = arith.constant 0.000000e+00 : f32
      %21 = vector.broadcast %cst_16 : f32 to vector<16x128xf32>
      %c0_17 = arith.constant 0 : index
      %c0_18 = arith.constant 0 : index
      %22 = vector.load %arg8[%c0_17, %c0_18] : memref<16x128xf32, #tpu.memory_space<vmem>>, vector<16x128xf32>
      tpu.vector_store %arg8[%c0_17, %c0_18], %21 {strides = array<i32>} : memref<16x128xf32, #tpu.memory_space<vmem>>, vector<16x128xf32>,
    } else {
    }
    %c0 = arith.constant 0 : index
    %c0_1 = arith.constant 0 : index
    %3 = vector.load %arg2[%c0, %c0_1] : memref<16x128xf32, #tpu.memory_space<vmem>>, vector<16x128xf32>
    %4 = arith.truncf %3 : vector<16x128xf32> to vector<16x128xbf16>
    %c0_2 = arith.constant 0 : index
    %c0_3 = arith.constant 0 : index
    %5 = vector.load %arg3[%c0_2, %c0_3] : memref<128x128xbf16, #tpu.memory_space<vmem>>, vector<128x128xbf16>
    %cst = arith.constant dense<0.000000e+00> : vector<16x128xf32>
    %6 = tpu.matmul %4, %5, %cst {dimension_numbers = #tpu.dot_dimension_numbers<[1], [0], [0], [1], [0, 0, 1, 1], [], []>} : vector<16x128xbf16>, vector<128x128xbf16>, vector<16x128xf32> -> vector<16x128xf32>
    %c0_4 = arith.constant 0 : index
    %c0_5 = arith.constant 0 : index
    %7 = vector.load %arg4[%c0_4, %c0_5] : memref<1x128xf32, #tpu.memory_space<vmem>>, vector<1x128xf32>
    %8 = vector.broadcast %7 : vector<1x128xf32> to vector<16x128xf32>
    %9 = arith.addf %6, %8 : vector<16x128xf32>
    %cst_6 = arith.constant 0.000000e+00 : f32
    %10 = vector.broadcast %cst_6 : f32 to vector<16x128xf32>
    %11 = arith.maximumf %9, %10 : vector<16x128xf32>
    %c0_7 = arith.constant 0 : index
    %c0_8 = arith.constant 0 : index
    %12 = vector.load %arg8[%c0_7, %c0_8] : memref<16x128xf32, #tpu.memory_space<vmem>>, vector<16x128xf32>
    %13 = arith.truncf %11 : vector<16x128xf32> to vector<16x128xbf16>
    %c0_9 = arith.constant 0 : index
    %c0_10 = arith.constant 0 : index
    %14 = vector.load %arg5[%c0_9, %c0_10] : memref<128x128xbf16, #tpu.memory_space<vmem>>, vector<128x128xbf16>
    %cst_11 = arith.constant dense<0.000000e+00> : vector<16x128xf32>
    %15 = tpu.matmul %13, %14, %cst_11 {dimension_numbers = #tpu.dot_dimension_numbers<[1], [0], [0], [1], [0, 0, 1, 1], [], []>} : vector<16x128xbf16>, vector<128x128xbf16>, vector<16x128xf32> -> vector<16x128xf32>
    %16 = arith.addf %12, %15 : vector<16x128xf32>
    %c0_12 = arith.constant 0 : index
    %c0_13 = arith.constant 0 : index
    %17 = vector.load %arg8[%c0_12, %c0_13] : memref<16x128xf32, #tpu.memory_space<vmem>>, vector<16x128xf32>
    tpu.vector_store %arg8[%c0_12, %c0_13], %16 {strides = array<i32>} : memref<16x128xf32, #tpu.memory_space<vmem>>, vector<16x128xf32>,
    %c0_i32_14 = arith.constant 0 : i32
    %18 = arith.cmpi eq, %arg1, %c0_i32_14 : i32
    %19 = arith.extui %18 : i1 to i32
    %c0_i32_15 = arith.constant 0 : i32
    %20 = arith.cmpi ne, %19, %c0_i32_15 : i32
    scf.if %20 {
      %c0_16 = arith.constant 0 : index
      %c0_17 = arith.constant 0 : index
      %21 = vector.load %arg8[%c0_16, %c0_17] : memref<16x128xf32, #tpu.memory_space<vmem>>, vector<16x128xf32>
      %c0_18 = arith.constant 0 : index
      %c0_19 = arith.constant 0 : index
      %22 = vector.load %arg6[%c0_18, %c0_19] : memref<1x128xf32, #tpu.memory_space<vmem>>, vector<1x128xf32>
      %23 = vector.broadcast %22 : vector<1x128xf32> to vector<16x128xf32>
      %24 = arith.addf %21, %23 : vector<16x128xf32>
      %c0_20 = arith.constant 0 : index
      %c0_21 = arith.constant 0 : index
      %25 = vector.load %arg7[%c0_20, %c0_21] : memref<16x128xf32, #tpu.memory_space<vmem>>, vector<16x128xf32>
      tpu.vector_store %arg7[%c0_20, %c0_21], %24 {strides = array<i32>} : memref<16x128xf32, #tpu.memory_space<vmem>>, vector<16x128xf32>,
    } else {
    }
    return
  }
  func.func @transform_0(%arg0: i32, %arg1: i32) -> (i32, i32) {
    %c0_i32 = arith.constant 0 : i32
    %c0_i32_0 = arith.constant 0 : i32
    return %arg0, %c0_i32 : i32, i32
  }
  func.func @transform_1(%arg0: i32, %arg1: i32) -> (i32, i32) {
    %c0_i32 = arith.constant 0 : i32
    %c0_i32_0 = arith.constant 0 : i32
    return %c0_i32, %arg1 : i32, i32
  }
  func.func @transform_2(%arg0: i32, %arg1: i32) -> (i32, i32) {
    %c0_i32 = arith.constant 0 : i32
    %c0_i32_0 = arith.constant 0 : i32
    return %c0_i32, %arg1 : i32, i32
  }
  func.func @transform_3(%arg0: i32, %arg1: i32) -> (i32, i32) {
    %c0_i32 = arith.constant 0 : i32
    %c0_i32_0 = arith.constant 0 : i32
    return %arg1, %c0_i32 : i32, i32
  }
  func.func @transform_4(%arg0: i32, %arg1: i32) -> (i32, i32) {
    %c0_i32 = arith.constant 0 : i32
    %c0_i32_0 = arith.constant 0 : i32
    %c0_i32_1 = arith.constant 0 : i32
    return %c0_i32, %c0_i32_0 : i32, i32
  }
  func.func @transform_5(%arg0: i32, %arg1: i32) -> (i32, i32) {
    %c0_i32 = arith.constant 0 : i32
    %c0_i32_0 = arith.constant 0 : i32
    return %arg0, %c0_i32 : i32, i32
  }
}

</mosaic_0001>

<bundles_post_ra>
// kernel: feed_forward.1
= control target key start
LH: loop header
LB: loop body
LE: loop exit
PB: predicated region body
PF: predicated region fallthrough
CT: control target
= control target key end

     0   :  { %v370_v0 = vmov 0.0   ;;  %vm371_vm0 = vmmov 0   ;;  %s468_s1 = inlined_call_operand.vmem [shape: bf16[128,128], index: 1, kind: input, shape index: {}]   ;;  %s469_s3 = inlined_call_operand.vmem [shape: bf16[128,128], index: 3, kind: input, shape index: {}]   ;;  %s470_s0 = inlined_call_operand.vmem [shape: f32[16,128], index: 0, kind: input, shape index: {}]   ;;  %s471_s2 = inlined_call_operand.vmem [shape: f32[1,128], index: 2, kind: input, shape index: {}]   ;;  %s472_s4 = inlined_call_operand.vmem [shape: f32[1,128], index: 4, kind: input, shape index: {}]   ;;  %s473_s5 = inlined_call_operand.vmem [shape: f32[16,128], index: 5, kind: output, shape index: {}]  }
   0x1   :  { %312 = vmatprep.subr.bf16.mxu0 %v370_v0  ;;  %v354_v1 = vld [vmem:[%s468_s1] sm:$0xff]   ;;  %328 = vmatprep.mubr.msk.bf16.mxu0 %vm371_vm0, %v370_v0  ;;  %v355_v2 = vld [vmem:[%s468_s1 + $0x8] sm:$0xff]   ;;  %v356_v3 = vld [vmem:[%s468_s1 + $0x10] sm:$0xff]  }
   0x2   :  { %332 = vmatprep.subr.bf16.mxu1 %v370_v0  ;;  %348 = vmatprep.mubr.msk.bf16.mxu1 %vm371_vm0, %v370_v0  ;;  %v362_v4 = vld [vmem:[%s469_s3] sm:$0xff]   ;;  %v357_v5 = vld [vmem:[%s468_s1 + $0x18] sm:$0xff]   ;;  %v363_v6 = vld [vmem:[%s469_s3 + $0x8] sm:$0xff]  }
   0x3   :  { %313 = vmatpush3.bf16.msra.mxu0 %v354_v1  ;;  %333 = vmatpush3.bf16.msra.mxu1 %v362_v4  ;;  %v358_v7 = vld [vmem:[%s468_s1 + $0x20] sm:$0xff]   ;;  %v364_v8 = vld [vmem:[%s469_s3 + $0x10] sm:$0xff]   ;;  %v359_v9 = vld [vmem:[%s468_s1 + $0x28] sm:$0xff]  }
   0x4   :  { %314 = vmatprep.subr.bf16.mxu0 %v370_v0  ;;  %334 = vmatprep.subr.bf16.mxu1 %v370_v0  ;;  %v365_v10 = vld [vmem:[%s469_s3 + $0x18] sm:$0xff]   ;;  %v360_v11 = vld [vmem:[%s468_s1 + $0x30] sm:$0xff]   ;;  %v366_v12 = vld [vmem:[%s469_s3 + $0x20] sm:$0xff]  }
   0x5   :  { %v361_v13 = vld [vmem:[%s468_s1 + $0x38] sm:$0xff]   ;;  %v27_v14 = vld [vmem:[%s470_s0] sm:$0xff]  ;;  %v28_v15 = vld [vmem:[%s470_s0 + $0x8] sm:$0xff] }
   0x6   :  { %v367_v16 = vld [vmem:[%s469_s3 + $0x28] sm:$0xff]   ;;  %v29_v17 = vpack.c.bf16 %v28_v15, %v27_v14  ;;  %v368_v18 = vld [vmem:[%s469_s3 + $0x30] sm:$0xff]   ;;  %v369_v19 = vld [vmem:[%s469_s3 + $0x38] sm:$0xff]  }
   0x7   :  { %315 = vmatpush3.bf16.msra.mxu0 %v355_v2  ;;  %335 = vmatpush3.bf16.msra.mxu1 %v363_v6  ;;  %v276_v20 = vld [vmem:[%s471_s2] ss:$0 sm:$0xff] }
   0x8   :  { %316 = vmatprep.subr.bf16.mxu0 %v370_v0  ;;  %336 = vmatprep.subr.bf16.mxu1 %v370_v0  ;;  %v293_v30 = vld [vmem:[%s472_s4] ss:$0 sm:$0xff] }
   0xb   :  { %317 = vmatpush3.bf16.msra.mxu0 %v356_v3  ;;  %337 = vmatpush3.bf16.msra.mxu1 %v364_v8 }
   0xc   :  { %318 = vmatprep.subr.bf16.mxu0 %v370_v0  ;;  %338 = vmatprep.subr.bf16.mxu1 %v370_v0 }
   0xf   :  { %319 = vmatpush3.bf16.msra.mxu0 %v357_v5  ;;  %339 = vmatpush3.bf16.msra.mxu1 %v365_v10 }
  0x10   :  { %320 = vmatprep.subr.bf16.mxu0 %v370_v0  ;;  %340 = vmatprep.subr.bf16.mxu1 %v370_v0 }
  0x13   :  { %321 = vmatpush3.bf16.msra.mxu0 %v358_v7  ;;  %341 = vmatpush3.bf16.msra.mxu1 %v366_v12 }
  0x14   :  { %322 = vmatprep.subr.bf16.mxu0 %v370_v0  ;;  %342 = vmatprep.subr.bf16.mxu1 %v370_v0 }
  0x17   :  { %323 = vmatpush3.bf16.msra.mxu0 %v359_v9  ;;  %343 = vmatpush3.bf16.msra.mxu1 %v367_v16 }
  0x18   :  { %324 = vmatprep.subr.bf16.mxu0 %v370_v0  ;;  %344 = vmatprep.subr.bf16.mxu1 %v370_v0 }
  0x1b   :  { %325 = vmatpush3.bf16.msra.mxu0 %v360_v11  ;;  %345 = vmatpush3.bf16.msra.mxu1 %v368_v18 }
  0x1c   :  { %326 = vmatprep.subr.bf16.mxu0 %v370_v0  ;;  %346 = vmatprep.subr.bf16.mxu1 %v370_v0 }
  0x1f   :  { %327 = vmatpush3.bf16.msra.mxu0 %v361_v13  ;;  %347 = vmatpush3.bf16.msra.mxu1 %v369_v19 }
  0x22   :  { %329 = vmatmul.mubr.bf16.vlgmr.msra.gmra.mrb[0].mxu0 %v29_v17 }
  0xf5   :  { %v135_v21 = vpop.f32.mrb[0].mxu0 }
  0xf6   :  { %v136_v22 = vadd.f32 %v276_v20, %v135_v21  ;;  %v330_v23 = vpop.f32.mrb[1].mxu0 }
  0xf7   :  { %v138_v24 = vpop.f32.mrb[2].mxu0 }
  0xf8   :  { %v139_v25 = vadd.f32 %v276_v20, %v138_v24  ;;  %v331_v26 = vpop.f32.mrb[3].mxu0  ;;  %v142_v27 = vmax.f32 %v136_v22, 0.0 }
  0xfa   :  { %v143_v28 = vmax.f32 %v139_v25, 0.0 }
  0xfc   :  { %v146_v29 = vpack.c.bf16 %v143_v28, %v142_v27 }
  0xfe   :  { %349 = vmatmul.mubr.bf16.vlgmr.msra.gmra.mrb[0].mxu1 %v146_v29 }
 0x1d1   :  { %v245_v31 = vpop.f32.mrb[0].mxu1 }
 0x1d2   :  { %v268_v32 = vadd.f32 %v293_v30, %v245_v31  ;;  %v350_v33 = vpop.f32.mrb[1].mxu1 }
 0x1d3   :  { %v248_v34 = vpop.f32.mrb[2].mxu1 }
 0x1d4   :  { %270 = vst [vmem:[%s473_s5] sm:$0xff] %v268_v32  ;;  %v269_v35 = vadd.f32 %v293_v30, %v248_v34  ;;  %v351_v36 = vpop.f32.mrb[3].mxu1 }
 0x1d6   :  { %271 = vst [vmem:[%s473_s5 + $0x8] sm:$0xff] %v269_v35 }

</bundles_post_ra>
